<compile_context>
chip_gen: v5e
topology: v5e:2x2
jax: 0.10.0
libtpu: 0.0.40
codegen_flags: <defaults>
</compile_context>

<pallas_src>
import jax
import jax.numpy as jnp
from jax import lax
from jax.experimental import pallas as pl
from jax.experimental.pallas import tpu as pltpu


def _round_up(x: int, m: int) -> int:
    return ((x + m - 1) // m) * m


def _make_partial_ce_kernel(n_actual: int, tile_n: int, tiles_per_split: int):
    """Kernel computing per-split sums of per-row cross entropy (lse - picked)."""

    def kernel(logits_ref, tgt_ref, out_ref):
        s = pl.program_id(0)   # split index (parallel across TensorCores)
        i = pl.program_id(1)   # row-tile index ("arbitrary" reduction axis)

        @pl.when(i == 0)
        def _():
            out_ref[...] = jnp.zeros_like(out_ref)

        x = logits_ref[...].astype(jnp.float32)          # (tile_n, C), f32 math
        tgt = tgt_ref[...]                               # (tile_n, 1)  int32

        # Row-wise numerically stable log-sum-exp.
        m = jnp.max(x, axis=-1, keepdims=True)
        lse = m + jnp.log(jnp.sum(jnp.exp(x - m), axis=-1, keepdims=True))

        # logits[r, target[r]] via one-hot lane mask (lane iota == target).
        col = lax.broadcasted_iota(jnp.int32, x.shape, 1)
        picked = jnp.sum(jnp.where(col == tgt, x, 0.0), axis=-1, keepdims=True)

        # Mask padded rows: global row index >= true batch size contributes 0.
        row = lax.broadcasted_iota(jnp.int32, (tile_n, 1), 0)
        global_row = (s * tiles_per_split + i) * tile_n + row
        ce_rows = jnp.where(global_row < n_actual, lse - picked, 0.0)

        # Accumulate the per-tile sum into element [0, 0] of the resident per-split
        # output block with a fully vectorized masked add (no scalar VMEM store).
        partial = jnp.sum(ce_rows)                       # scalar f32
        rr = lax.broadcasted_iota(jnp.int32, (8, 128), 0)
        cc = lax.broadcasted_iota(jnp.int32, (8, 128), 1)
        out_ref[...] += jnp.where((rr == 0) & (cc == 0), partial, 0.0)

    return kernel


def focal_loss3(logits, targets, focusing_param=2, balance_param=0.25,
                tile_n=512, num_splits=2):
    """logits: (N, C) float (f32 or bf16); targets: (N,) int. Returns scalar f32."""
    n, c = logits.shape
    itemsize = int(jnp.dtype(logits.dtype).itemsize)

    # Avoid pointless padding for tiny batches.
    num_splits = max(1, min(int(num_splits), pl.cdiv(n, 8)))

    # --- Tile sizing: keep each (double-buffered) logits tile within a budget that
    #     fits every generation (v7x has only 64 MiB VMEM / 32 MiB scoped default).
    vmem_tile_budget = 16 * 1024 * 1024                        # bytes per logits buffer
    max_tile = max(8, (vmem_tile_budget // (c * itemsize)) // 8 * 8)
    rows_per_split = pl.cdiv(n, num_splits)
    tile_n = max(8, min(_round_up(int(tile_n), 8), max_tile,
                        _round_up(rows_per_split, 8)))
    tiles_per_split = pl.cdiv(rows_per_split, tile_n)
    padded_n = num_splits * tiles_per_split * tile_n

    # --- Pad inputs; padded rows are masked inside the kernel (divisor stays true N).
    logits_p = jnp.pad(logits, ((0, padded_n - n), (0, 0)))
    targets_p = jnp.pad(targets.reshape(n, 1).astype(jnp.int32),
                        ((0, padded_n - n), (0, 0)))

    # Advisory cost estimate so XLA schedules surrounding ops sensibly.
    cost = pl.CostEstimate(
        flops=int(6 * n * c),
        transcendentals=int(n * c),            # the exp in the row-wise LSE
        bytes_accessed=int(n * c * itemsize + n * 4 + num_splits * 8 * 128 * 4),
    )

    # Explicit VMEM limit: double-buffered logits tile + (lane-padded) targets tile.
    per_step_bytes = tile_n * c * itemsize + tile_n * 128 * 4
    vmem_limit = int(min(100 * 1024 * 1024,
                         max(32 * 1024 * 1024, 4 * per_step_bytes)))

    # Lane-dense per-split output blocks (8,128); only [0,0] of each carries the sum.
    partials = pl.pallas_call(
        _make_partial_ce_kernel(n, tile_n, tiles_per_split),
        out_shape=jax.ShapeDtypeStruct((num_splits * 8, 128), jnp.float32),
        grid_spec=pltpu.PrefetchScalarGridSpec(
            num_scalar_prefetch=0,
            grid=(num_splits, tiles_per_split),
            in_specs=[
                pl.BlockSpec((tile_n, c), lambda s, i: (s * tiles_per_split + i, 0)),
                pl.BlockSpec((tile_n, 1), lambda s, i: (s * tiles_per_split + i, 0)),
            ],
            out_specs=pl.BlockSpec((8, 128), lambda s, i: (s, 0)),
        ),
        compiler_params=pltpu.CompilerParams(
            dimension_semantics=("parallel", "arbitrary"),
            vmem_limit_bytes=vmem_limit,
        ),
        cost_estimate=cost,
    )(logits_p, targets_p)

    # --- Scalar focal epilogue (a handful of scalar ops; kept in JAX so the per-core
    #     partial sums can be combined). Non-accumulator slots are exactly zero.
    ce = jnp.sum(partials) / jnp.float32(n)          # mean cross entropy
    logpt = -ce
    pt = jnp.exp(logpt)
    one_minus_pt = 1.0 - pt
    fp = float(focusing_param)
    if fp.is_integer() and 0 <= int(fp) <= 8:
        # Integer power as repeated multiplication (avoids exp/log lowering of pow).
        w = jnp.float32(1.0)
        for _ in range(int(fp)):
            w = w * one_minus_pt
    else:
        w = one_minus_pt ** fp
    focal = -w * logpt
    return jnp.float32(balance_param) * focal


def _ref_focal_loss3(lg, tg, gamma=2.0, alpha=0.25):
    """Pure-JAX reference (same math, no Pallas)."""
    lg32 = lg.astype(jnp.float32)
    lse = jax.scipy.special.logsumexp(lg32, axis=-1)
    picked = jnp.take_along_axis(lg32, tg[:, None], axis=-1)[:, 0]
    ce = jnp.mean(lse - picked)
    logpt = -ce
    pt = jnp.exp(logpt)
    return alpha * (-((1.0 - pt) ** gamma) * logpt)


if __name__ == "__main__":
    key = jax.random.PRNGKey(0)
    k1, k2, k3, k4 = jax.random.split(key, 4)

    # Small case matching the module's expected (batch, classes) usage.
    N, C = 8, 32
    logits = jax.random.normal(k1, (N, C), dtype=jnp.float32)
    targets = jax.random.randint(k2, (N,), 0, C, dtype=jnp.int32)

    loss = focal_loss3(logits, targets, focusing_param=2, balance_param=0.25)
    jax.block_until_ready(loss)
    ref = _ref_focal_loss3(logits, targets)
    assert jnp.allclose(loss, ref, rtol=1e-5, atol=1e-6), (loss, ref)

    # Ragged batch (exercises padded-row masking across split / tile boundaries).
    N2, C2 = 100, 32
    logits2 = jax.random.normal(k3, (N2, C2), dtype=jnp.float32)
    targets2 = jax.random.randint(k4, (N2,), 0, C2, dtype=jnp.int32)
    loss2 = focal_loss3(logits2, targets2)
    jax.block_until_ready(loss2)
    ref2 = _ref_focal_loss3(logits2, targets2)
    assert jnp.allclose(loss2, ref2, rtol=1e-5, atol=1e-6), (loss2, ref2)

    # bf16 logits from HBM (halved memory traffic), f32 math inside the kernel.
    logits_bf16 = logits.astype(jnp.bfloat16)
    loss_bf16 = focal_loss3(logits_bf16, targets)
    jax.block_until_ready(loss_bf16)
    ref_bf16 = _ref_focal_loss3(logits_bf16, targets)
    assert jnp.allclose(loss_bf16, ref_bf16, rtol=1e-4, atol=1e-5), (loss_bf16, ref_bf16)

    print("KERNEL_OK")
</pallas_src>

<mosaic_0001>
module attributes {stable_mosaic.version = 11 : i64} {
  func.func @kernel(%arg0: i32, %arg1: i32, %arg2: memref<8x32xf32, #tpu.memory_space<vmem>>, %arg3: memref<8x1xi32, #tpu.memory_space<vmem>>, %arg4: memref<8x128xf32, #tpu.memory_space<vmem>>) attributes {dimension_semantics = [#tpu.dimension_semantics<parallel>, #tpu.dimension_semantics<arbitrary>], iteration_bounds = array<i64: 1, 1>, scalar_prefetch = 0 : i64, scratch_operands = 0 : i64, tpu.core_type = #tpu.core_type<tc>, window_params = [{transform_indices = @transform_0, window_bounds = array<i64: 8, 32>}, {transform_indices = @transform_1, window_bounds = array<i64: 8, 1>}, {transform_indices = @transform_2, window_bounds = array<i64: 8, 128>}]} {
    %c0_i32 = arith.constant 0 : i32
    %0 = arith.cmpi eq, %arg1, %c0_i32 : i32
    %1 = arith.extui %0 : i1 to i32
    %c0_i32_0 = arith.constant 0 : i32
    %2 = arith.cmpi ne, %1, %c0_i32_0 : i32
    scf.if %2 {
      %cst_17 = arith.constant 0.000000e+00 : f32
      %49 = vector.broadcast %cst_17 : f32 to vector<8x128xf32>
      %c0_18 = arith.constant 0 : index
      %c0_19 = arith.constant 0 : index
      %50 = vector.load %arg4[%c0_18, %c0_19] : memref<8x128xf32, #tpu.memory_space<vmem>>, vector<8x128xf32>
      tpu.vector_store %arg4[%c0_18, %c0_19], %49 {strides = array<i32>} : memref<8x128xf32, #tpu.memory_space<vmem>>, vector<8x128xf32>,
    } else {
    }
    %c0 = arith.constant 0 : index
    %c0_1 = arith.constant 0 : index
    %3 = vector.load %arg2[%c0, %c0_1] : memref<8x32xf32, #tpu.memory_space<vmem>>, vector<8x32xf32>
    %c0_2 = arith.constant 0 : index
    %c0_3 = arith.constant 0 : index
    %4 = vector.load %arg3[%c0_2, %c0_3] : memref<8x1xi32, #tpu.memory_space<vmem>>, vector<8x1xi32>
    %cst = arith.constant dense<0xFF800000> : vector<8xf32>
    %5 = vector.multi_reduction <maximumf>, %3, %cst [1] : vector<8x32xf32> to vector<8xf32>
    %6 = vector.shape_cast %5 : vector<8xf32> to vector<8x1xf32>
    %7 = vector.broadcast %6 : vector<8x1xf32> to vector<8x32xf32>
    %8 = arith.subf %3, %7 : vector<8x32xf32>
    %9 = math.exp %8 : vector<8x32xf32>
    %cst_4 = arith.constant dense<0.000000e+00> : vector<8xf32>
    %10 = vector.multi_reduction <add>, %9, %cst_4 [1] : vector<8x32xf32> to vector<8xf32>
    %11 = vector.shape_cast %10 : vector<8xf32> to vector<8x1xf32>
    %12 = math.log %11 : vector<8x1xf32>
    %13 = arith.addf %6, %12 : vector<8x1xf32>
    %14 = tpu.iota {dimensions = array<i32: 1>} : vector<8x32xi32>
    %15 = vector.broadcast %4 : vector<8x1xi32> to vector<8x32xi32>
    %16 = arith.cmpi eq, %14, %15 : vector<8x32xi32>
    %cst_5 = arith.constant 0.000000e+00 : f32
    %17 = vector.broadcast %cst_5 : f32 to vector<8x32xf32>
    %18 = arith.select %16, %3, %17 : vector<8x32xi1>, vector<8x32xf32>
    %cst_6 = arith.constant dense<0.000000e+00> : vector<8xf32>
    %19 = vector.multi_reduction <add>, %18, %cst_6 [1] : vector<8x32xf32> to vector<8xf32>
    %20 = vector.shape_cast %19 : vector<8xf32> to vector<8x1xf32>
    %21 = tpu.iota {dimensions = array<i32: 0>} : vector<8x1xi32>
    %c1_i32 = arith.constant 1 : i32
    %22 = arith.muli %arg0, %c1_i32 : i32
    %23 = arith.addi %22, %arg1 : i32
    %c8_i32 = arith.constant 8 : i32
    %24 = arith.muli %23, %c8_i32 : i32
    %25 = vector.broadcast %24 : i32 to vector<8x1xi32>
    %26 = arith.addi %25, %21 : vector<8x1xi32>
    %c8_i32_7 = arith.constant 8 : i32
    %27 = vector.broadcast %c8_i32_7 : i32 to vector<8x1xi32>
    %28 = arith.cmpi slt, %26, %27 : vector<8x1xi32>
    %29 = arith.subf %13, %20 : vector<8x1xf32>
    %cst_8 = arith.constant 0.000000e+00 : f32
    %30 = vector.broadcast %cst_8 : f32 to vector<8x1xf32>
    %31 = arith.select %28, %29, %30 : vector<8x1xi1>, vector<8x1xf32>
    %32 = vector.shape_cast %31 : vector<8x1xf32> to vector<1x8x1xf32>
    %cst_9 = arith.constant dense<0.000000e+00> : vector<1xf32>
    %33 = vector.multi_reduction <add>, %32, %cst_9 [1, 2] : vector<1x8x1xf32> to vector<1xf32>
    %34 = vector.shape_cast %33 : vector<1xf32> to vector<1x1x1xf32>
    %35 = vector.extract %34[0, 0, 0] : f32 from vector<1x1x1xf32>
    %36 = tpu.iota {dimensions = array<i32: 0>} : vector<8x128xi32>
    %37 = tpu.iota {dimensions = array<i32: 1>} : vector<8x128xi32>
    %c0_10 = arith.constant 0 : index
    %c0_11 = arith.constant 0 : index
    %38 = vector.load %arg4[%c0_10, %c0_11] : memref<8x128xf32, #tpu.memory_space<vmem>>, vector<8x128xf32>
    %c0_i32_12 = arith.constant 0 : i32
    %39 = vector.broadcast %c0_i32_12 : i32 to vector<8x128xi32>
    %40 = arith.cmpi eq, %36, %39 : vector<8x128xi32>
    %c0_i32_13 = arith.constant 0 : i32
    %41 = vector.broadcast %c0_i32_13 : i32 to vector<8x128xi32>
    %42 = arith.cmpi eq, %37, %41 : vector<8x128xi32>
    %43 = arith.andi %40, %42 : vector<8x128xi1>
    %cst_14 = arith.constant 0.000000e+00 : f32
    %44 = vector.broadcast %35 : f32 to vector<8x128xf32>
    %45 = vector.broadcast %cst_14 : f32 to vector<8x128xf32>
    %46 = arith.select %43, %44, %45 : vector<8x128xi1>, vector<8x128xf32>
    %47 = arith.addf %38, %46 : vector<8x128xf32>
    %c0_15 = arith.constant 0 : index
    %c0_16 = arith.constant 0 : index
    %48 = vector.load %arg4[%c0_15, %c0_16] : memref<8x128xf32, #tpu.memory_space<vmem>>, vector<8x128xf32>
    tpu.vector_store %arg4[%c0_15, %c0_16], %47 {strides = array<i32>} : memref<8x128xf32, #tpu.memory_space<vmem>>, vector<8x128xf32>,
    return
  }
  func.func @transform_0(%arg0: i32, %arg1: i32) -> (i32, i32) {
    %c1_i32 = arith.constant 1 : i32
    %0 = arith.muli %arg0, %c1_i32 : i32
    %1 = arith.addi %0, %arg1 : i32
    %c0_i32 = arith.constant 0 : i32
    %c0_i32_0 = arith.constant 0 : i32
    return %1, %c0_i32 : i32, i32
  }
  func.func @transform_1(%arg0: i32, %arg1: i32) -> (i32, i32) {
    %c1_i32 = arith.constant 1 : i32
    %0 = arith.muli %arg0, %c1_i32 : i32
    %1 = arith.addi %0, %arg1 : i32
    %c0_i32 = arith.constant 0 : i32
    %c0_i32_0 = arith.constant 0 : i32
    return %1, %c0_i32 : i32, i32
  }
  func.func @transform_2(%arg0: i32, %arg1: i32) -> (i32, i32) {
    %c0_i32 = arith.constant 0 : i32
    %c0_i32_0 = arith.constant 0 : i32
    return %arg0, %c0_i32 : i32, i32
  }
}

</mosaic_0001>

<bundles_post_ra>
// kernel: tpu_custom_call.1
= control target key start
LH: loop header
LB: loop body
LE: loop exit
PB: predicated region body
PF: predicated region fallthrough
CT: control target
= control target key end

     0   :  { %vm53_vm0 = vcmask 261120   ;;  %s197_s0 = inlined_call_operand.vmem [shape: f32[8,32], index: 0, kind: input, shape index: {}]   ;;  %s198_s1 = inlined_call_operand.vmem [shape: s32[8,1], index: 1, kind: input, shape index: {}]   ;;  %s199_s2 = inlined_call_operand.hbm [shape: f32[8,128], index: 2, kind: output, shape index: {}]  }
   0x1   :  { %v51_v0 = vld [vmem:[%s197_s0] sm:$0xff] }
   0x2   :  { %7 = vsyncpa [#allocation3], 0  ;;  %v54_v1 = vsel %vm53_vm0, %v51_v0, -inf  ;;  %v168_v2 = vmov 0   ;;  %v52_v3 = vld [vmem:[%s198_s1] sm:$0xff]  ;;  %v66_v9 = vlaneseq  ;;  %vm85_vm2 = vcmask 7168  }
   0x3   :  { %137 = vset.pattern.permute.xlu0 %v168_v2  ;;  %s169_s0 = smov [#allocation2]   ;;  %s111_s16 = sshll.u32 %s199_s2, 4  ;;  %s112_s16 = int_to_ptr.hbm [resolvable:$true] %s111_s16 }
   0x4   :  { %55 = vmax.xlane.f32.xlu0 %v54_v1  ;;  %v67_v10 = vand.u32 127, %v66_v9  ;;  %v77_v28 = vshrl.u32 %v66_v9, 7  ;;  %s109_s1 = sshll.u32 %s169_s0, 4  ;;  %s110_s1 = int_to_ptr.vmem [resolvable:$true] %s109_s1 }
   0x6   :  { %vm97_vm3 = vcmp.eq.s32.totalorder %v77_v28, 0  ;;  %vm98_vm4 = vcmp.eq.s32.totalorder %v67_v10, 0 }
   0x7   :  { %vm99_vm5 = vmand %vm97_vm3, %vm98_vm4 }
  0x18   :  { %69 = vperm.xlu0 %137, %v52_v3  }
  0x77   :  { %v56_v4 = vpop.xlane.xlu0 %55 }
  0x78   :  { %v57_v5 = vsub.f32 %v51_v0, %v56_v4 }
  0x7a   :  { %v58_v6 = vmul.f32 1.442695, %v57_v5 }
  0x7c   :  { %138 = vpow2.f32 %v58_v6 }
  0x82   :  { %v139_v7 = vpop.eup %138 }
  0x83   :  { %v60_v8 = vsel %vm53_vm0, %v139_v7, 0.0 }
  0x84   :  { %61 = vadd.xlane.f32.xlu1 %v60_v8 }
  0x8a   :  { %v70_v11 = vpop.permute.xlu0 %69 }
  0x8b   :  { %vm71_vm1 = vcmp.eq.s32.totalorder %v67_v10, %v70_v11 }
  0x8c   :  { %v72_v12 = vsel %vm71_vm1, %v51_v0, 0.0 }
  0x8d   :  { %v73_v13 = vsel %vm53_vm0, %v72_v12, 0.0 }
  0x8e   :  { %74 = vadd.xlane.f32.xlu1 %v73_v13 }
  0xf7   :  { %v62_v14 = vpop.xlane.xlu1 %61 }
  0xf8   :  { %140 = vlog2.f32 %v62_v14 }
  0xfe   :  { %v141_v15 = vpop.eup %140 }
  0xff   :  { %v64_v16 = vmul.f32 0.6931472, %v141_v15 }
 0x101   :  { %v65_v17 = vadd.f32 %v64_v16, %v56_v4  ;;  %v75_v18 = vpop.xlane.xlu1 %74 }
 0x103   :  { %v83_v19 = vsub.f32 %v65_v17, %v75_v18 }
 0x105   :  { %v86_v20 = vsel %vm85_vm2, %v83_v19, 0.0 }
 0x106   :  { %87 = vadd.xlane.f32.xlu2 %v86_v20 }
 0x179   :  { %v88_v21 = vpop.xlane.xlu2 %87 }
 0x17a   :  { %v89_v22 = vrot.slane %v88_v21, 4 }
 0x17c   :  { %v90_v23 = vadd.f32 %v89_v22, %v88_v21 }
 0x17e   :  { %v91_v24 = vrot.slane %v90_v23, 2 }
 0x180   :  { %v92_v25 = vadd.f32 %v91_v24, %v90_v23 }
 0x182   :  { %v93_v26 = vrot.slane %v92_v25, 1 }
 0x184   :  { %v94_v27 = vadd.f32 %v93_v26, %v92_v25 }
 0x186   :  { %132 = vpush %v94_v27 }
 0x1b7   :  { %s133_s13 = spop %132 }
 0x1b8   :  { %v100_v29 = vstv %s133_s13 }
 0x1b9   :  { %v101_v30 = vsel %vm99_vm5, %v100_v29, 0.0 }
 0x1ba   :  { %103 = vst [vmem:[#allocation2] sm:$0xff] %v101_v30 }
 0x1bb   :  { %114 = dma.vmem_to_hbm [thread:$0]  %s110_s1, 128, %s112_s16, [#allocation3]  }
 0x1bc   :  { %166 = dma.done.wait [#allocation3], 128  }
 0x1bd   :  { %167 = vsyncadd [#allocation3], 4294967168 }
 0x1be   :  { %119 = vsyncpa [#allocation3], 1 }

</bundles_post_ra>
